<compile_context>
chip_gen: v7x
topology: tpu7x:2x2x1
jax: 0.10.0
libtpu: 0.0.40
codegen_flags: <defaults>
</compile_context>

<pallas_src>
import jax
import jax.numpy as jnp
from jax.experimental import pallas as pl
from jax.experimental.pallas import tpu as pltpu


def _gcn_layer_stack_kernel(a_ref, x_ref, w_ref, b_ref, o_ref):
    """All GCN layers fused; one grid step handles one batch element.

    a_ref: (N, N)     bf16 normalized adjacency A_hat (shared, constant index map)
    x_ref: (N, C)     bf16 node features of the current batch element
    w_ref: (L, C, C)  bf16 stacked GCNConv linear weights (shared)
    b_ref: (L, 1, C)  f32  stacked GCNConv biases (shared)
    o_ref: (N, C)     output (input dtype) for the current batch element
    """
    a = a_ref[...]                                # bf16
    x = x_ref[...].astype(jnp.float32)            # running activation in f32
    num_layers = w_ref.shape[0]
    # Static Python unroll (L == 2); use lax.fori_loop for larger L.
    for l in range(num_layers):
        xw = jnp.dot(x.astype(jnp.bfloat16), w_ref[l],
                     preferred_element_type=jnp.float32)
        x = jnp.dot(a, xw.astype(jnp.bfloat16),
                    preferred_element_type=jnp.float32) + b_ref[l]
    o_ref[...] = x.astype(o_ref.dtype)


def gcn_fused_forward_pallas(a_norm, x, w_stack, b_stack):
    """Run all GCN layers in one pallas_call with a parallel batch grid.

    a_norm : (N, N)    normalized adjacency (shared across the batch)
    x      : (B, N, C) node features
    w_stack: (L, C, C) per-layer weights
    b_stack: (L, C)    per-layer biases
    returns: (B, N, C) final-layer attention features (dtype of x)
    """
    B, N, C = x.shape
    L, Cin, Cout = w_stack.shape
    assert Cin == C and Cout == C, "layers stack, so in_channels == out_channels"

    # bf16 MXU operands (f32 accumulation inside the kernel); bias stays f32.
    a_bf16 = a_norm.astype(jnp.bfloat16)
    x_bf16 = x.astype(jnp.bfloat16)
    w_bf16 = w_stack.astype(jnp.bfloat16)
    b3 = b_stack.reshape(L, 1, Cout).astype(jnp.float32)

    out = pl.pallas_call(
        _gcn_layer_stack_kernel,
        out_shape=jax.ShapeDtypeStruct((B, N, Cout), x.dtype),
        grid=(B,),
        in_specs=[
            # Shared operands: constant index maps -> DMA'd once, VMEM-resident.
            pl.BlockSpec((N, N), lambda b: (0, 0)),            # A_hat
            pl.BlockSpec((None, N, C), lambda b: (b, 0, 0)),   # per-batch x
            pl.BlockSpec((L, C, Cout), lambda b: (0, 0, 0)),   # W stack
            pl.BlockSpec((L, 1, Cout), lambda b: (0, 0, 0)),   # bias stack
        ],
        out_specs=pl.BlockSpec((None, N, Cout), lambda b: (b, 0, 0)),
        compiler_params=pltpu.CompilerParams(
            dimension_semantics=("parallel",)),
    )(a_bf16, x_bf16, w_bf16, b3)
    return out


def gcn_normalize(phy_graph):
    """torch_geometric GCNConv normalization: D^-1/2 (A + I) D^-1/2."""
    n = phy_graph.shape[0]
    # Binarizes phy_graph (edge presence), matching dense_to_sparse with no
    # edge weights fed to GCNConv.
    a = (phy_graph != 0).astype(jnp.float32) + jnp.eye(n, dtype=jnp.float32)
    deg = a.sum(axis=-1)
    dinv = jnp.where(deg > 0, jax.lax.rsqrt(deg), 0.0)
    return dinv[:, None] * a * dinv[None, :]


def init_gcn_params(key, num_layers, in_channels, out_channels):
    """Deterministic per-layer (W, bias) matching GCNConv parameter shapes."""
    params = []
    for i in range(num_layers):
        kw, kb = jax.random.split(jax.random.fold_in(key, i))
        scale = 1.0 / jnp.sqrt(jnp.float32(in_channels))
        w = jax.random.normal(kw, (in_channels, out_channels), jnp.float32) * scale
        b = jax.random.normal(kb, (out_channels,), jnp.float32) * 0.01
        params.append((w, b))
    return params


def gcn_forward(params, phy_graph, x, memory):
    """Forward of GCN. `memory` is only consumed by PGConv (undefined
    upstream) and is therefore unused here."""
    del memory  # TODO(synk): consumed only by the undefined PGConv.
    a_norm = gcn_normalize(phy_graph)
    w_stack = jnp.stack([w for (w, _) in params], axis=0)
    b_stack = jnp.stack([b for (_, b) in params], axis=0)
    out = gcn_fused_forward_pallas(a_norm, x, w_stack, b_stack)
    # TODO(synk): PGConv output (probability_feature, layer_elbo) unknown;
    # treated as 0 so out == attention_feature and elbo == 0.
    elbo = jnp.float32(0.0)
    return out, elbo


if __name__ == "__main__":
    key = jax.random.PRNGKey(0)
    k_x, k_m, k_g, k_p = jax.random.split(key, 4)

    batch = 2
    node_num = 8
    in_channels = 32
    out_channels = 32   # layers stack, so in == out
    num_layers = 2

    # Deterministic binary physical graph (symmetric, no self loops).
    upper = (jax.random.uniform(k_g, (node_num, node_num)) > 0.6).astype(jnp.float32)
    phy_graph = jnp.triu(upper, k=1)
    phy_graph = phy_graph + phy_graph.T

    x = jax.random.normal(k_x, (batch, node_num, in_channels), jnp.float32)
    memory = jax.random.normal(k_m, (batch, node_num, in_channels), jnp.float32)

    params = init_gcn_params(k_p, num_layers, in_channels, out_channels)

    out, elbo = gcn_forward(params, phy_graph, x, memory)
    out = jax.block_until_ready(out)
    elbo = jax.block_until_ready(elbo)

    # Plain-JAX reference mirroring the kernel's bf16-operand / f32-accumulate
    # math (so the comparison isolates kernel correctness, not bf16 rounding).
    a_bf = gcn_normalize(phy_graph).astype(jnp.bfloat16)
    x_ref = x.astype(jnp.float32)
    for (w, b) in params:
        xw = jnp.einsum("bnc,cd->bnd",
                        x_ref.astype(jnp.bfloat16), w.astype(jnp.bfloat16),
                        preferred_element_type=jnp.float32)
        x_ref = jnp.einsum("nm,bmc->bnc",
                           a_bf, xw.astype(jnp.bfloat16),
                           preferred_element_type=jnp.float32) + b

    assert out.shape == (batch, node_num, out_channels)
    assert jnp.allclose(out, x_ref, atol=1e-2, rtol=1e-2), "mismatch vs reference"

    print("KERNEL_OK")
</pallas_src>

<mosaic_0001>
module attributes {stable_mosaic.version = 11 : i64} {
  func.func @_gcn_layer_stack_kernel(%arg0: i32, %arg1: memref<8x8xbf16, #tpu.memory_space<vmem>>, %arg2: memref<1x8x32xbf16, #tpu.memory_space<vmem>>, %arg3: memref<2x32x32xbf16, #tpu.memory_space<vmem>>, %arg4: memref<2x1x32xf32, #tpu.memory_space<vmem>>, %arg5: memref<1x8x32xf32, #tpu.memory_space<vmem>>) attributes {dimension_semantics = [#tpu.dimension_semantics<parallel>], iteration_bounds = array<i64: 2>, scalar_prefetch = 0 : i64, scratch_operands = 0 : i64, tpu.core_type = #tpu.core_type<tc>, window_params = [{pipeline_mode = #tpu.pipeline_mode<synchronous>, transform_indices = @transform_0, window_bounds = array<i64: 8, 8>}, {transform_indices = @transform_1, window_bounds = array<i64: 1, 8, 32>}, {pipeline_mode = #tpu.pipeline_mode<synchronous>, transform_indices = @transform_2, window_bounds = array<i64: 2, 32, 32>}, {pipeline_mode = #tpu.pipeline_mode<synchronous>, transform_indices = @transform_3, window_bounds = array<i64: 2, 1, 32>}, {transform_indices = @transform_4, window_bounds = array<i64: 1, 8, 32>}]} {
    %c0 = arith.constant 0 : index
    %c0_0 = arith.constant 0 : index
    %0 = vector.load %arg1[%c0, %c0_0] : memref<8x8xbf16, #tpu.memory_space<vmem>>, vector<8x8xbf16>
    %c0_1 = arith.constant 0 : index
    %c0_2 = arith.constant 0 : index
    %c0_3 = arith.constant 0 : index
    %1 = vector.load %arg2[%c0_1, %c0_2, %c0_3] : memref<1x8x32xbf16, #tpu.memory_space<vmem>>, vector<1x8x32xbf16>
    %2 = vector.shape_cast %1 : vector<1x8x32xbf16> to vector<8x32xbf16>
    %3 = arith.extf %2 : vector<8x32xbf16> to vector<8x32xf32>
    %4 = arith.truncf %3 : vector<8x32xf32> to vector<8x32xbf16>
    %c0_4 = arith.constant 0 : index
    %c0_5 = arith.constant 0 : index
    %c0_6 = arith.constant 0 : index
    %5 = vector.load %arg3[%c0_4, %c0_5, %c0_6] : memref<2x32x32xbf16, #tpu.memory_space<vmem>>, vector<1x32x32xbf16>
    %6 = vector.shape_cast %5 : vector<1x32x32xbf16> to vector<32x32xbf16>
    %cst = arith.constant dense<0.000000e+00> : vector<8x32xf32>
    %7 = tpu.matmul %4, %6, %cst {dimension_numbers = #tpu.dot_dimension_numbers<[1], [0], [0], [1], [0, 0, 1, 1], [], []>} : vector<8x32xbf16>, vector<32x32xbf16>, vector<8x32xf32> -> vector<8x32xf32>
    %8 = arith.truncf %7 : vector<8x32xf32> to vector<8x32xbf16>
    %cst_7 = arith.constant dense<0.000000e+00> : vector<8x32xf32>
    %9 = tpu.matmul %0, %8, %cst_7 {dimension_numbers = #tpu.dot_dimension_numbers<[1], [0], [0], [1], [0, 0, 1, 1], [], []>} : vector<8x8xbf16>, vector<8x32xbf16>, vector<8x32xf32> -> vector<8x32xf32>
    %c0_8 = arith.constant 0 : index
    %c0_9 = arith.constant 0 : index
    %c0_10 = arith.constant 0 : index
    %10 = vector.load %arg4[%c0_8, %c0_9, %c0_10] : memref<2x1x32xf32, #tpu.memory_space<vmem>>, vector<1x1x32xf32>
    %11 = vector.shape_cast %10 : vector<1x1x32xf32> to vector<1x32xf32>
    %12 = vector.broadcast %11 : vector<1x32xf32> to vector<8x32xf32>
    %13 = arith.addf %9, %12 : vector<8x32xf32>
    %14 = arith.truncf %13 : vector<8x32xf32> to vector<8x32xbf16>
    %c1 = arith.constant 1 : index
    %c0_11 = arith.constant 0 : index
    %c0_12 = arith.constant 0 : index
    %15 = vector.load %arg3[%c1, %c0_11, %c0_12] : memref<2x32x32xbf16, #tpu.memory_space<vmem>>, vector<1x32x32xbf16>
    %16 = vector.shape_cast %15 : vector<1x32x32xbf16> to vector<32x32xbf16>
    %cst_13 = arith.constant dense<0.000000e+00> : vector<8x32xf32>
    %17 = tpu.matmul %14, %16, %cst_13 {dimension_numbers = #tpu.dot_dimension_numbers<[1], [0], [0], [1], [0, 0, 1, 1], [], []>} : vector<8x32xbf16>, vector<32x32xbf16>, vector<8x32xf32> -> vector<8x32xf32>
    %18 = arith.truncf %17 : vector<8x32xf32> to vector<8x32xbf16>
    %cst_14 = arith.constant dense<0.000000e+00> : vector<8x32xf32>
    %19 = tpu.matmul %0, %18, %cst_14 {dimension_numbers = #tpu.dot_dimension_numbers<[1], [0], [0], [1], [0, 0, 1, 1], [], []>} : vector<8x8xbf16>, vector<8x32xbf16>, vector<8x32xf32> -> vector<8x32xf32>
    %c1_15 = arith.constant 1 : index
    %c0_16 = arith.constant 0 : index
    %c0_17 = arith.constant 0 : index
    %20 = vector.load %arg4[%c1_15, %c0_16, %c0_17] : memref<2x1x32xf32, #tpu.memory_space<vmem>>, vector<1x1x32xf32>
    %21 = vector.shape_cast %20 : vector<1x1x32xf32> to vector<1x32xf32>
    %22 = vector.broadcast %21 : vector<1x32xf32> to vector<8x32xf32>
    %23 = arith.addf %19, %22 : vector<8x32xf32>
    %c0_18 = arith.constant 0 : index
    %c0_19 = arith.constant 0 : index
    %c0_20 = arith.constant 0 : index
    %24 = vector.load %arg5[%c0_18, %c0_19, %c0_20] : memref<1x8x32xf32, #tpu.memory_space<vmem>>, vector<1x8x32xf32>
    %25 = vector.shape_cast %24 : vector<1x8x32xf32> to vector<8x32xf32>
    %26 = vector.shape_cast %23 : vector<8x32xf32> to vector<1x8x32xf32>
    tpu.vector_store %arg5[%c0_18, %c0_19, %c0_20], %26 {strides = array<i32>} : memref<1x8x32xf32, #tpu.memory_space<vmem>>, vector<1x8x32xf32>,
    return
  }
  func.func @transform_0(%arg0: i32) -> (i32, i32) {
    %c0_i32 = arith.constant 0 : i32
    %c0_i32_0 = arith.constant 0 : i32
    %c0_i32_1 = arith.constant 0 : i32
    return %c0_i32, %c0_i32_0 : i32, i32
  }
  func.func @transform_1(%arg0: i32) -> (i32, i32, i32) {
    %c0_i32 = arith.constant 0 : i32
    %c0_i32_0 = arith.constant 0 : i32
    %c0_i32_1 = arith.constant 0 : i32
    return %arg0, %c0_i32, %c0_i32_0 : i32, i32, i32
  }
  func.func @transform_2(%arg0: i32) -> (i32, i32, i32) {
    %c0_i32 = arith.constant 0 : i32
    %c0_i32_0 = arith.constant 0 : i32
    %c0_i32_1 = arith.constant 0 : i32
    %c0_i32_2 = arith.constant 0 : i32
    return %c0_i32, %c0_i32_0, %c0_i32_1 : i32, i32, i32
  }
  func.func @transform_3(%arg0: i32) -> (i32, i32, i32) {
    %c0_i32 = arith.constant 0 : i32
    %c0_i32_0 = arith.constant 0 : i32
    %c0_i32_1 = arith.constant 0 : i32
    %c0_i32_2 = arith.constant 0 : i32
    return %c0_i32, %c0_i32_0, %c0_i32_1 : i32, i32, i32
  }
  func.func @transform_4(%arg0: i32) -> (i32, i32, i32) {
    %c0_i32 = arith.constant 0 : i32
    %c0_i32_0 = arith.constant 0 : i32
    %c0_i32_1 = arith.constant 0 : i32
    return %arg0, %c0_i32, %c0_i32_0 : i32, i32, i32
  }
}

</mosaic_0001>

<bundles_post_ra>
// kernel: tpu_custom_call.1
= control target key start
LH: loop header
LB: loop body
LE: loop exit
PB: predicated region body
PF: predicated region fallthrough
CT: control target
= control target key end

     0   :  { %9 = vsyncpa [#allocation3], 0  ;;  %s1165_s0 = inlined_call_operand.hbm [shape: bf16[8,8], index: 0, kind: input, shape index: {}]   ;;  %s1166_s1 = inlined_call_operand.hbm [shape: bf16[2,8,32], index: 1, kind: input, shape index: {}]   ;;  %s1167_s2 = inlined_call_operand.hbm [shape: bf16[2,32,32], index: 2, kind: input, shape index: {}]   ;;  %s1168_s3 = inlined_call_operand.vmem [shape: f32[2,1,32], index: 3, kind: input, shape index: {}]   ;;  %s1169_s4 = inlined_call_operand.hbm [shape: f32[2,8,32], index: 4, kind: output, shape index: {}]  }
   0x1   :  { %10 = vsyncpa [#allocation6], 0 }
   0x2   :  { %12 = vsyncpa [#allocation6 + $0x1], 0 }
   0x3   :  { %13 = vsyncpa [#allocation4], 0 }
   0x4   :  { %15 = vsyncpa [#allocation4 + $0x1], 0  ;;  %s913_s15 = smov 0   ;;  %s915_s16 = smov 0  }
   0x5   :  { %s917_s17 = smov 0   ;;  %s919_s18 = smov 0  }
   0x6 LB: > { %s934_s19 = sadd.s32 4294967295, %s878_s18   ;;  %s578_s20 = sadd.s32 4294967294, %s878_s18   ;;  %s878_s18 = sphi %s919_s18, %s1191_s18   ;;  %s874_s17 = sphi %s917_s17, %s1190_s17   ;;  %s870_s16 = sphi %s915_s16, %s1189_s16   ;;  %s866_s15 = sphi %s913_s15, %s1188_s15  }
   0x7   : > { %p62_p0 = scmp.ne.s32.totalorder %s870_s16, %s866_s15  ;;  %p1170_p1 = scmp.eq.s32.totalorder %s934_s19, 0 }
   0x8   : > { %p134_p3 = scmp.eq.s32.totalorder %s578_s20, 1  ;;  %p579_p5 = scmp.ge.s32.totalorder %s878_s18, 1 }
   0x9   : > { %p943_p4 = por %p1170_p1, %p62_p0  ;;  %p141_p7 = scmp.lt.s32.totalorder %s878_s18, 3 }
   0xa   : > { %p948_p6 = por %p134_p3, %p62_p0  ;;  %s880_s24 = smov [#allocation7]  }
   0xb   : > { %s1173_s21 = scalar_select %p943_p4, 1, 0 }
   0xc   : > { %s1174_s22 = scalar_select %p948_p6, 1, 0 }
   0xd   : > { %p953_p8 = pnand %p579_p5, %p141_p7  ;;  %s164_s25 = sshll.u32 %s880_s24, 4  ;;  %s957_s25 = int_to_ptr.vmem [resolvable:$true] %s164_s25 }
   0xe   : > { %s881_s27 = smov [#allocation2]   ;;  %s718_s5 = scalar_lea.hbm %s1167_s2, 512 }
   0xf   : > { %p655_p9 = pneg %p953_p8  ;;  %s154_s28 = sshll.u32 %s881_s27, 4  ;;  %s968_s28 = int_to_ptr.vmem [resolvable:$true] %s154_s28 }
  0x10   : > { %p719_p12 = scmp.ne.s32.totalorder %s1167_s2, %s718_s5  ;;  %p725_p5 = scmp.lt.u32.totalorder %s718_s5, %s1167_s2 }
  0x11   : > { %p964_p11 = pnand %p655_p9, %p1170_p1 }
  0x13   : > { %p720_p13 = pneg %p964_p11 }
  0x15   : > { %p721_p0 = pnand %p720_p13, %p719_p12 }
  0x17   : > { %p722_p3 = pneg %p721_p0 }
  0x19   : > { %p727_p7 = pnand %p725_p5, %p722_p3 }
  0x1b   : > { %730 = shalt.err (!%p727_p7)
}
  0x1c   : > { %s731_s10 = scalar_lea.vmem %s957_s25, 512  ;;  %p739_p2 = scmp.lt.s32.totalorder %s957_s25, %s957_s25 }
  0x1d   : > { %p732_p9 = scmp.ne.s32.totalorder %s957_s25, %s731_s10  ;;  %p740_p12 = scmp.lt.s32.totalorder %s731_s10, %s731_s10 }
  0x1f   : > { %p734_p10 = pnand %p732_p9, %p720_p13  ;;  %p741_p0 = por %p740_p12, %p739_p2 }
  0x21   : > { %p735_p1 = pneg %p734_p10 }
  0x23   : > { %p742_p6 = pnand %p741_p0, %p735_p1 }
  0x25   : > { %745 = shalt.err (!%p742_p6)
}
  0x26   : > { %s882_s11 = smov 64   ;;  %s883_s12 = smov 4  }
  0x27   : > { %661 = dma.hbm_to_vmem [thread:$0]  (!%p964_p11), %s1167_s2, 512, %s957_s25, [#allocation6], %s882_s11, %s882_s11, %s883_s12  }
  0x28   : > { %s746_s27 = scalar_lea.hbm %s1165_s0, 64 }
  0x29   : > { %p747_p2 = scmp.ne.s32.totalorder %s1165_s0, %s746_s27  ;;  %p753_p10 = scmp.lt.u32.totalorder %s746_s27, %s1165_s0 }
  0x2b   : > { %p749_p1 = pnand %p747_p2, %p720_p13 }
  0x2d   : > { %p750_p6 = pneg %p749_p1 }
  0x2f   : > { %p755_p3 = pnand %p753_p10, %p750_p6 }
  0x31   : > { %758 = shalt.err (!%p755_p3)
}
  0x32   : > { %s759_s25 = scalar_lea.vmem %s968_s28, 64  ;;  %p767_p12 = scmp.lt.s32.totalorder %s968_s28, %s968_s28 }
  0x33   : > { %p760_p5 = scmp.ne.s32.totalorder %s968_s28, %s759_s25  ;;  %p768_p0 = scmp.lt.s32.totalorder %s759_s25, %s759_s25 }
  0x35   : > { %p762_p7 = pnand %p760_p5, %p720_p13  ;;  %p769_p2 = por %p768_p0, %p767_p12 }
  0x37   : > { %p763_p9 = pneg %p762_p7 }
  0x39   : > { %p770_p1 = pnand %p769_p2, %p763_p9 }
  0x3b   : > { %773 = shalt.err (!%p770_p1)
}
  0x3c   : > { %658 = dma.hbm_to_vmem [thread:$0]  (!%p964_p11), %s1165_s0, 64, %s968_s28, [#allocation3]  }
  0x3d   : > { %s1023_s9 = sadd.s32 1, %s878_s18   ;;  %s49_s26 = sadd.s32 1, %s874_s17 }
  0x3e   : > { %s46_s10 = ssub.s32 %s878_s18, %s1023_s9  ;;  %p56_p13 = scmp.ne.s32.totalorder %s874_s17, %s870_s16 }
  0x3f   : > { %p47_p6 = scmp.eq.s32.totalorder %s46_s10, 0  ;;  %p57_p10 = scmp.eq.s32.totalorder %s878_s18, 0 }
  0x40   : > { %p1177_p3 = scmp.eq.s32.totalorder %s934_s19, 1  ;;  %p672_p7 = scmp.lt.s32.totalorder %s878_s18, 2 }
  0x41   : > { %s1039_s12 = scalar_select %p47_p6, %s874_s17, %s49_s26  }
  0x42   : > { %p1033_p5 = por %p1177_p3, %p56_p13  ;;  %p58_p9 = por %p57_p10, %p56_p13 }
  0x43   : > { %s181_s13 = sand.u32 1, %s878_s18   ;;  %s183_s14 = sand.u32 1, %s874_s17  }
  0x44   : > { %s1178_s11 = scalar_select %p1033_p5, 1, 0 }
  0x45   : > { %s583_s28 = sshll.u32 %s183_s14, 2  ;;  %s584_s20 = sshll.u32 %s878_s18, 6 }
  0x46   : > { %s1047_s29 = scalar_lea.hbm %s1166_s1, %s584_s20  ;;  %s185_s30 = scalar_lea.vmem [#allocation5], %s583_s28 }
  0x47   : > { %s192_s5 = sshll.u32 %s185_s30, 4  ;;  %p1049_p11 = pnand %p672_p7, %p58_p9  ;;  %s1053_s5 = int_to_ptr.vmem [resolvable:$true] %s192_s5 }
  0x48   : > { %s182_s25 = scalar_lea.sflag [#allocation6], %s181_s13  ;;  %s774_s7 = scalar_lea.hbm %s1047_s29, 64 }
  0x49   : > { %p775_p12 = scmp.ne.s32.totalorder %s1047_s29, %s774_s7  ;;  %p776_p0 = pneg %p1049_p11 }
  0x4a   : > { %s779_s10 = scalar_lea.hbm %s1166_s1, 128  ;;  %p780_p13 = scmp.lt.u32.totalorder %s1047_s29, %s1166_s1 }
  0x4b   : > { %p777_p2 = pnand %p776_p0, %p775_p12  ;;  %p781_p6 = scmp.lt.u32.totalorder %s779_s10, %s774_s7 }
  0x4c   : > { %p783_p3 = scmp.lt.u32.totalorder %s774_s7, %s1047_s29 }
  0x4d   : > { %p778_p1 = pneg %p777_p2  ;;  %p782_p10 = por %p781_p6, %p780_p13 }
  0x4f   : > { %p784_p7 = por %p783_p3, %p782_p10 }
  0x51   : > { %p785_p9 = pnand %p784_p7, %p778_p1 }
  0x53   : > { %788 = shalt.err (!%p785_p9)
}
  0x54   : > { %s789_s13 = scalar_lea.vmem %s1053_s5, 64  ;;  %s884_s20 = smov [#allocation5]  }
  0x55   : > { %p790_p12 = scmp.ne.s32.totalorder %s1053_s5, %s789_s13  ;;  %s794_s24 = sshll.u32 %s884_s20, 4  ;;  %s795_s24 = int_to_ptr.vmem [resolvable:$false] %s794_s24 }
  0x56   : > { %s796_s27 = scalar_lea.vmem %s795_s24, 128  ;;  %p797_p4 = scmp.lt.s32.totalorder %s1053_s5, %s795_s24 }
  0x57   : > { %p792_p2 = pnand %p790_p12, %p776_p0  ;;  %p798_p13 = scmp.lt.s32.totalorder %s796_s27, %s789_s13 }
  0x59   : > { %p793_p5 = pneg %p792_p2  ;;  %p799_p6 = por %p798_p13, %p797_p4 }
  0x5b   : > { %p800_p10 = pnand %p799_p6, %p793_p5 }
  0x5d   : > { %803 = shalt.err (!%p800_p10)
}
  0x5e   : > { %665 = dma.hbm_to_vmem [thread:$0]  (!%p1049_p11), %s1047_s29, 64, %s1053_s5, %s182_s25  }
  0x5f   : > { %201 = sbr.rel (%p953_p8) target bundleno = 1001 (0x3e9), region = 36  ;;  %p1180_p0 = scmp.eq.s32.totalorder (!%p953_p8), %s934_s19, 0 }
  0x66   : > { %849 = dma.done.wait (%p1180_p0), [#allocation3], 64   ;;  %p1181_p1 = pmov %p1180_p0 }
  0x67   : > { %s207_s30 = sand.u32 1, %s934_s19   ;;  %s1088_s7 = sand.u32 1, %s870_s16  }
  0x68   : > { %851 = vsyncadd (%p1181_p1), [#allocation3], 4294967232  ;;  %s587_s6 = sshll.u32 %s1088_s7, 2  ;;  %s208_s8 = scalar_lea.sflag [#allocation6], %s207_s30 }
  0x69   : > { %s211_s26 = scalar_lea.vmem [#allocation5], %s587_s6  ;;  %p1182_p4 = scmp.ne.s32.totalorder %s1173_s21, 0 }
  0x6b   : > { %853 = dma.done.wait (%p1182_p4), %s208_s8, 64  }
  0x6c   : > { %855 = vsyncadd (%p1182_p4), %s208_s8, 4294967232  ;;  %p1183_p8 = pmov %p1180_p0 }
  0x6d   : > { %p1184_p5 = pmov %p1180_p0 }
  0x6e   : > { %857 = dma.done.wait (%p1183_p8), [#allocation6], 512  }
  0x6f   : > { %859 = vsyncadd (%p1184_p5), [#allocation6], 4294966784  ;;  %v885_v0 = vmov 0.0   ;;  %vm886_vm0 = vmmov 0   ;;  %v714_v1 = vld [vmem:[#allocation7] sm:$0xff]   ;;  %v715_v2 = vld [vmem:[#allocation7 + $0x8] sm:$0xff]  }
  0x70   : > { %615 = vmatprep.subr.bf16.mxu0 %v885_v0  ;;  %619 = vmatprep.mubr.msk.bf16.mxu0 %vm886_vm0, %v885_v0  ;;  %v242_v3 = vld [vmem:[%s211_s26] sm:$0xf]  ;;  %vm259_vm1 = vcmask 261120   ;;  %vm315_vm2 = vcmask 1043456   ;;  %v241_v10 = vld [vmem:[#allocation2] sm:$0xf] }
  0x71   : > { %623 = vmatprep.subr.bf16.mxu1 %v885_v0  ;;  %625 = vmatprep.mubr.msk.bf16.mxu1 %vm886_vm0, %v885_v0  ;;  %vm311_vm3 = vcmask 64512   ;;  %v716_v11 = vld [vmem:[#allocation7 + $0x10] sm:$0xff]   ;;  %v717_v12 = vld [vmem:[#allocation7 + $0x18] sm:$0xff]   ;;  %s589_s29 = sshll.u32 %s1088_s7, 3  ;;  %s602_s10 = sshll.u32 %s934_s19, 7 }
  0x72   : > { %616 = vmatpush3.bf16.msra.mxu0 %v714_v1  ;;  %v593_v13 = vld [vmem:[%s1168_s3] ss:$0 sm:$0xff]  ;;  %v599_v26 = vld [vmem:[%s1168_s3 + $0x1] ss:$0 sm:$0xff]  ;;  %s239_s14 = scalar_lea.vmem [#allocation8], %s589_s29  ;;  %s1120_s24 = scalar_lea.hbm %s1169_s4, %s602_s10 }
  0x73   : > { %617 = vmatprep.subr.bf16.mxu0 %v885_v0  ;;  %s487_s28 = sshll.u32 %s239_s14, 4  ;;  %s474_s19 = scalar_lea.sflag [#allocation4], %s1088_s7  ;;  %s1122_s28 = int_to_ptr.vmem [resolvable:$true] %s487_s28 }
  0x74   : > { %s804_s27 = scalar_lea.vmem %s1122_s28, 128  ;;  %p1185_p3 = scmp.ne.s32.totalorder %s1178_s11, 0 }
  0x75   : > { %p805_p11 = scmp.ne.s32.totalorder %s1122_s28, %s804_s27  ;;  %s887_s30 = smov [#allocation8]  }
  0x76   : > { %618 = vmatpush3.bf16.msra.mxu0 %v715_v2  ;;  %s808_s6 = sshll.u32 %s887_s30, 4  ;;  %s809_s6 = int_to_ptr.vmem [resolvable:$false] %s808_s6 }
  0x77   : > { %637 = vmatprep.subr.bf16.mxu0 %v885_v0  ;;  %p806_p7 = pnand %p805_p11, %p1185_p3  ;;  %s810_s8 = scalar_lea.vmem %s809_s6, 256 }
  0x78   : > { %p811_p12 = scmp.lt.s32.totalorder %s1122_s28, %s809_s6  ;;  %p812_p2 = scmp.lt.s32.totalorder %s810_s8, %s804_s27 }
  0x79   : > { %620 = vmatmul.mubr.msk.bf16.vlgmr.msra.gmra.mrb[0].mxu0 %vm259_vm1, %v242_v3  ;;  %p807_p9 = pneg %p806_p7 }
  0x7a   : > { %639 = vmatprep.mubr.msk.bf16.mxu0 %vm886_vm0, %v885_v0  ;;  %p813_p13 = por %p812_p2, %p811_p12 }
  0x7c   : > { %p814_p6 = pnand %p813_p13, %p807_p9 }
 0x14c   : > { %v297_v4 = vpop.f32.mrb[0].mxu0 }
 0x14d   : > { %v303_v5 = vpack.c.bf16 %v297_v4, %v297_v4  ;;  %v621_v6 = vpop.f32.mrb[1].mxu0 }
 0x14e   : > { %v300_v7 = vpop.f32.mrb[2].mxu0 }
 0x14f   : > { %v622_v8 = vpop.f32.mrb[3].mxu0  ;;  %v317_v9 = vsel %vm315_vm2, %v303_v5, 0 }
 0x150   : > { %624 = vmatpush3.bf16.msra.mxu1 %v317_v9 }
 0x151   : > { %629 = vmatprep.subr.bf16.mxu1 %v885_v0 }
 0x153   : > { %626 = vmatmul.mubr.msk.bf16.vlgmr.msra.gmra.mrb[0].mxu1 %vm311_vm3, %v241_v10 }
 0x154   : > { %630 = vmatpush3.bf16.msra.mxu1 %v716_v11  ;;  %633 = vmatprep.mubr.msk.bf16.mxu1 %vm886_vm0, %v885_v0 }
 0x155   : > { %631 = vmatprep.subr.bf16.mxu1 %v885_v0 }
 0x158   : > { %632 = vmatpush3.bf16.msra.mxu1 %v717_v12 }
 0x226   : > { %v353_v14 = vpop.f32.mrb[0].mxu1 }
 0x227   : > { %v354_v15 = vadd.f32 %v593_v13, %v353_v14  ;;  %v627_v16 = vpop.f32.mrb[1].mxu1 }
 0x228   : > { %v356_v17 = vpop.f32.mrb[2].mxu1 }
 0x229   : > { %v359_v18 = vpack.c.bf16 %v354_v15, %v354_v15  ;;  %v628_v19 = vpop.f32.mrb[3].mxu1 }
 0x22b   : > { %634 = vmatmul.mubr.msk.bf16.vlgmr.msra.gmra.mrb[4].mxu1 %vm259_vm1, %v359_v18 }
 0x2fe   : > { %v414_v20 = vpop.f32.mrb[4].mxu1 }
 0x2ff   : > { %v420_v21 = vpack.c.bf16 %v414_v20, %v414_v20  ;;  %v635_v22 = vpop.f32.mrb[5].mxu1 }
 0x300   : > { %v417_v23 = vpop.f32.mrb[6].mxu1 }
 0x301   : > { %v430_v24 = vsel %vm315_vm2, %v420_v21, 0  ;;  %v636_v25 = vpop.f32.mrb[7].mxu1 }
 0x302   : > { %638 = vmatpush3.bf16.msra.mxu0 %v430_v24 }
 0x305   : > { %640 = vmatmul.mubr.msk.bf16.vlgmr.msra.gmra.mrb[4].mxu0 %vm311_vm3, %v241_v10 }
 0x3d8   : > { %v466_v27 = vpop.f32.mrb[4].mxu0 }
 0x3d9   : > { %v467_v28 = vadd.f32 %v599_v26, %v466_v27  ;;  %v641_v29 = vpop.f32.mrb[5].mxu0 }
 0x3da   : > { %v469_v30 = vpop.f32.mrb[6].mxu0 }
 0x3db   : > { %v642_v31 = vpop.f32.mrb[7].mxu0  ;;  %472 = vst.msk [vmem:[%s239_s14] sm:$0xff] %vm259_vm1, %v467_v28 }
 0x3dc   : > { %817 = shalt.err (!%p814_p6)
}
 0x3dd   : > { %s818_s7 = scalar_lea.hbm %s1120_s24, 128  ;;  %s822_s23 = scalar_lea.hbm %s1169_s4, 256 }
 0x3de   : > { %p819_p10 = scmp.ne.s32.totalorder %s1120_s24, %s818_s7  ;;  %p823_p4 = scmp.lt.u32.totalorder %s1120_s24, %s1169_s4 }
 0x3df   : > { %p824_p8 = scmp.lt.u32.totalorder %s822_s23, %s818_s7  ;;  %p826_p11 = scmp.lt.u32.totalorder %s818_s7, %s1120_s24 }
 0x3e0   : > { %p820_p0 = pnand %p819_p10, %p1185_p3 }
 0x3e1   : > { %p825_p5 = por %p824_p8, %p823_p4 }
 0x3e2   : > { %p821_p1 = pneg %p820_p0 }
 0x3e3   : > { %p827_p7 = por %p826_p11, %p825_p5 }
 0x3e5   : > { %p828_p9 = pnand %p827_p7, %p821_p1 }
 0x3e7   : > { %831 = shalt.err (!%p828_p9)
}
 0x3e8   : > { %653 = dma.vmem_to_hbm [thread:$0]  (%p1185_p3), %s1122_s28, 128, %s1120_s24, %s474_s19  }
 0x3e9 PF: > { %s499_s25 = sand.u32 1, %s866_s15   ;;  %p1186_p12 = scmp.ne.s32.totalorder %s1174_s22, 0 }
 0x3ea   : > { %p1187_p2 = scmp.ge.s32.totalorder %s878_s18, 2  ;;  %s500_s10 = scalar_lea.sflag [#allocation4], %s499_s25 }
 0x3ec   : > { %p667_p13 = pnand %p1187_p2, %p1186_p12 }
 0x3ee   : > { %861 = dma.done.wait (!%p667_p13), %s500_s10, 128  }
 0x3ef   : > { %863 = vsyncadd (!%p667_p13), %s500_s10, 4294967168  ;;  %p18_p6 = scmp.ge.s32.totalorder %s1023_s9, 4   ;;  %s1188_s15 = smov %s870_s16 }
 0x3f0   : > { %s1189_s16 = smov %s874_s17  ;;  %s1190_s17 = smov %s1039_s12 }
 0x3f1   : > { %s1191_s18 = smov %s1023_s9  ;;  %20 = sbr.rel (!%p18_p6) target bundleno = 6 (0x6), region = 92 }
 0x3f8   :  { %505 = vsyncpa [#allocation3], 1 }
 0x3f9   :  { %507 = vsyncpa [#allocation3 + $0x1], 1 }
 0x3fa   :  { %508 = vsyncpa [#allocation6], 1 }
 0x3fb   :  { %510 = vsyncpa [#allocation6 + $0x1], 1 }
 0x3fc   :  { %511 = vsyncpa [#allocation4], 1 }
 0x3fd   :  { %513 = vsyncpa [#allocation4 + $0x1], 1 }

</bundles_post_ra>
